<compile_context>
chip_gen: v5e
topology: v5e:2x2
jax: 0.10.0
libtpu: 0.0.40
codegen_flags: <defaults>
</compile_context>

<pallas_src>
import jax
import jax.numpy as jnp
from jax.experimental import pallas as pl
from jax.experimental.pallas import tpu as pltpu

_TM_TARGET = 512                      # row tile (parallel axis)
_TK_CAP = 2048                        # reduction tile cap (>= 2 MiB bf16 A per step)
_RESIDENT_RHS_BYTES = 2 * 1024 * 1024  # keep the narrow RHS fully VMEM-resident below this


def _round_up(x, m):
    return ((x + m - 1) // m) * m


def _largest_aligned_divisor(n, cap, align=128):
    """Largest multiple of `align` that divides n and is <= cap."""
    best = align
    d = align
    while d <= min(cap, n):
        if n % d == 0:
            best = d
        d += align
    return best


def _pick_tiling(num_nodes):
    """Return (n_pad, tm, tk).

    Review-driven choices:
      * pad n up to a multiple of the row-tile target instead of collapsing the
        tile to 128 (128-wide tiles hit ~29% of HBM roofline vs ~85% at 512);
      * grow tk (reduction axis) toward 2048 so each grid step streams >= 2 MiB
        of bf16 adjacency;
      * keep n_pad // tm >= 2 so the "parallel" row axis can split across v7x's
        two TensorCores.
    """
    n_pad = _round_up(num_nodes, 128)
    if n_pad <= _TM_TARGET:
        tm = n_pad // 2 if n_pad >= 256 else n_pad
        return n_pad, tm, n_pad
    n_pad = _round_up(n_pad, _TM_TARGET)
    tm = _TM_TARGET
    tk = n_pad if n_pad <= _TK_CAP else _largest_aligned_divisor(n_pad, _TK_CAP)
    return n_pad, tm, tk


def _make_gcn_kernel(*, pre_transform, emit_prescaled, rhs_resident, tk):
    """Fused (A+I)-aggregation + normalization (+ optional feature transform) kernel."""

    def body(a_ref, rhs_ref, dinv_ref, b_ref, w_ref, o_ref, acc_ref):
        k = pl.program_id(1)

        @pl.when(k == 0)
        def _():
            acc_ref[...] = jnp.zeros_like(acc_ref)

        if rhs_resident:
            start = pl.multiple_of(k * tk, tk)
            rhs = rhs_ref[pl.ds(start, tk), :]
        else:
            rhs = rhs_ref[...]

        acc_ref[...] += jnp.dot(a_ref[...], rhs, preferred_element_type=jnp.float32)

        @pl.when(k == pl.num_programs(1) - 1)
        def _():
            dinv = dinv_ref[...]                                   # [tm, 1]
            if pre_transform:
                # W already folded into rhs in the wrapper.
                z = dinv * acc_ref[...] + b_ref[...]               # [tm, f_out]
            else:
                z = jnp.dot(dinv * acc_ref[...], w_ref[...],
                            preferred_element_type=jnp.float32) + b_ref[...]
            if emit_prescaled:
                # Fold the next layer's D^{-1/2} into this store:
                # dinv >= 0  =>  dinv * relu(z) == relu(dinv * z).
                z = dinv * z
            o_ref[...] = jnp.maximum(z, 0.0).astype(o_ref.dtype)

    if pre_transform:
        def kernel(a_ref, rhs_ref, dinv_ref, b_ref, o_ref, acc_ref):
            body(a_ref, rhs_ref, dinv_ref, b_ref, None, o_ref, acc_ref)
        return kernel
    return body


def gcn_conv_relu(a_pad, dinv_pad, x, w, b, *, tm, tk,
                  prescaled_in=False, emit_prescaled=False):
    """One GCNConv layer + relu: relu(A_hat @ x @ W + b).

    If `prescaled_in`, x is already dinv * (previous activation) in bf16.
    If `emit_prescaled`, returns dinv * relu(...) in bf16 (next layer's operand).
    """
    n_pad = a_pad.shape[0]
    f_in, f_out = w.shape

    # Apply W on the narrower side of the aggregation (review: min(f_in, f_out)).
    pre_transform = f_out < f_in

    x_scaled = x if prescaled_in else dinv_pad * x
    if pre_transform:
        rhs = jnp.dot(x_scaled.astype(jnp.float32), w,
                      preferred_element_type=jnp.float32).astype(jnp.bfloat16)
        f_rhs = f_out
    else:
        rhs = x_scaled.astype(jnp.bfloat16)
        f_rhs = f_in

    # Keep the narrow RHS fully VMEM-resident when small: with a constant index_map it
    # is DMA'd once instead of once per (i, k) grid step.
    rhs_resident = n_pad * f_rhs * 2 <= _RESIDENT_RHS_BYTES
    if rhs_resident:
        rhs_spec = pl.BlockSpec((n_pad, f_rhs), lambda i, k: (0, 0))
    else:
        rhs_spec = pl.BlockSpec((tk, f_rhs), lambda i, k: (k, 0))

    out_dtype = jnp.bfloat16 if emit_prescaled else jnp.float32
    grid = (n_pad // tm, n_pad // tk)

    in_specs = [
        pl.BlockSpec((tm, tk), lambda i, k: (i, k)),       # (A+I), bf16 HBM stream
        rhs_spec,                                          # dinv*x (or dinv*x @ W)
        pl.BlockSpec((tm, 1), lambda i, k: (i, 0)),        # dinv rows
        pl.BlockSpec((1, f_out), lambda i, k: (0, 0)),     # bias
    ]
    operands = [a_pad, rhs, dinv_pad, b]
    if not pre_transform:
        in_specs.append(pl.BlockSpec((f_in, f_out), lambda i, k: (0, 0)))  # W
        operands.append(w)

    flops = 2 * n_pad * n_pad * f_rhs
    if not pre_transform:
        flops += 2 * n_pad * f_in * f_out
    cost = pl.CostEstimate(
        flops=flops,
        transcendentals=0,
        bytes_accessed=(n_pad * n_pad * 2 + n_pad * f_rhs * 2
                        + n_pad * f_out * (2 if emit_prescaled else 4)),
    )

    kernel = _make_gcn_kernel(pre_transform=pre_transform,
                              emit_prescaled=emit_prescaled,
                              rhs_resident=rhs_resident, tk=tk)

    return pl.pallas_call(
        kernel,
        out_shape=jax.ShapeDtypeStruct((n_pad, f_out), out_dtype),
        grid_spec=pltpu.PrefetchScalarGridSpec(
            num_scalar_prefetch=0,
            grid=grid,
            in_specs=in_specs,
            out_specs=pl.BlockSpec((tm, f_out), lambda i, k: (i, 0)),
            scratch_shapes=[pltpu.VMEM((tm, f_rhs), jnp.float32)],
        ),
        compiler_params=pltpu.CompilerParams(
            dimension_semantics=("parallel", "arbitrary"),
            # v5e's scoped-VMEM default is 16 MiB; the enlarged double-buffered
            # A tiles plus the resident RHS need headroom there.
            vmem_limit_bytes=32 * 1024 * 1024,
        ),
        cost_estimate=cost,
    )(*operands)


def prepare_graph(edge_index, num_nodes):
    """One-time graph preprocessing (hoist out of the forward path for static graphs).

    Scatters (A + missing self loops) directly at padded size (no separate f32 pad
    pass), casts to bf16 once, and returns dinv = deg^{-1/2} (0 on padded rows).
    """
    n_pad, tm, tk = _pick_tiling(num_nodes)
    src = edge_index[0]
    dst = edge_index[1]
    adj = jnp.zeros((n_pad, n_pad), jnp.float32).at[dst, src].add(1.0)
    # add_remaining_self_loops: unit self loop only where none exists, real nodes only.
    diag = jnp.diagonal(adj)
    valid = jnp.arange(n_pad) < num_nodes
    adj = adj + jnp.diag(jnp.where(valid & (diag == 0.0), 1.0, 0.0))
    deg = adj.sum(axis=1)
    dinv = jnp.where(deg > 0, 1.0 / jnp.sqrt(jnp.maximum(deg, 1.0)), 0.0)
    a_pad = adj.astype(jnp.bfloat16)
    dinv_pad = dinv.reshape(n_pad, 1).astype(jnp.float32)
    return a_pad, dinv_pad, n_pad, tm, tk


def gcn_forward(params, x0, graph):
    a_pad, dinv_pad, n_pad, tm, tk = graph
    num_nodes = x0.shape[0]
    x_pad = jnp.pad(x0.astype(jnp.float32), ((0, n_pad - num_nodes), (0, 0)))

    # Layer 1: GCNConv(input_dim, 32) + relu; emits dinv*relu(.) in bf16 for layer 2.
    h1p = gcn_conv_relu(a_pad, dinv_pad, x_pad, params["w1"], params["b1"],
                        tm=tm, tk=tk, prescaled_in=False, emit_prescaled=True)
    # Layer 2: GCNConv(32, 1) + relu; f_out < f_in so W2 is pre-applied in the wrapper
    # and the aggregation streams a 1-column RHS with a (tm, 1) accumulator.
    h2 = gcn_conv_relu(a_pad, dinv_pad, h1p, params["w2"], params["b2"],
                       tm=tm, tk=tk, prescaled_in=True, emit_prescaled=False)
    return h2[:num_nodes]


def simple_hetero_gcn_forward(params, x, edge_index):
    """Mirrors SimpleHeteroGCN.forward: x = x[0]; two GCNConv + relu layers."""
    x0 = x[0]
    graph = prepare_graph(edge_index, x0.shape[0])  # hoist this for static graphs
    return gcn_forward(params, x0, graph)


def glorot(key, fan_in, fan_out):
    limit = jnp.sqrt(6.0 / (fan_in + fan_out))
    return jax.random.uniform(key, (fan_in, fan_out), jnp.float32, -limit, limit)


def init_params(input_dim, hidden_dim=32, output_dim=1, seed=0):
    k1, k2 = jax.random.split(jax.random.PRNGKey(seed))
    return {
        "w1": glorot(k1, input_dim, hidden_dim),
        "b1": jnp.zeros((1, hidden_dim), jnp.float32),
        "w2": glorot(k2, hidden_dim, output_dim),
        "b2": jnp.zeros((1, output_dim), jnp.float32),
    }


def _reference_forward(params, x0, edge_index):
    """Pure-JAX f32 reference of the PyG GCNConv semantics (for tolerance check)."""
    n = x0.shape[0]
    adj = jnp.zeros((n, n), jnp.float32).at[edge_index[1], edge_index[0]].add(1.0)
    diag = jnp.diagonal(adj)
    adj = adj + jnp.diag(jnp.where(diag == 0.0, 1.0, 0.0))
    deg = adj.sum(axis=1)
    dinv = jnp.where(deg > 0, 1.0 / jnp.sqrt(deg), 0.0)
    a_hat = dinv[:, None] * adj * dinv[None, :]
    h1 = jnp.maximum(a_hat @ x0 @ params["w1"] + params["b1"], 0.0)
    h2 = jnp.maximum(a_hat @ h1 @ params["w2"] + params["b2"], 0.0)
    return h2


if __name__ == "__main__":
    num_nodes = 16
    input_dim = 8

    key = jax.random.PRNGKey(0)
    kx, _ = jax.random.split(key)
    x0 = jax.random.normal(kx, (num_nodes, input_dim), jnp.float32)
    x = (x0,)  # heterogeneous input: tuple of per-node-type feature matrices

    # Small deterministic graph: bidirectional ring over the nodes.
    idx = jnp.arange(num_nodes, dtype=jnp.int32)
    nxt = (idx + 1) % num_nodes
    edge_index = jnp.stack(
        [jnp.concatenate([idx, nxt]), jnp.concatenate([nxt, idx])], axis=0
    )  # [2, 2*num_nodes]

    params = init_params(input_dim)

    out = simple_hetero_gcn_forward(params, x, edge_index)
    jax.block_until_ready(out)
    assert out.shape == (num_nodes, 1)

    # bf16 aggregation operands with f32 accumulation -> loose tolerance vs f32 ref.
    ref = _reference_forward(params, x0, edge_index)
    max_err = float(jnp.max(jnp.abs(out - ref)))
    assert max_err < 5e-2, f"max abs err {max_err}"

    print("KERNEL_OK")
</pallas_src>

<mosaic_0001>
module attributes {stable_mosaic.version = 11 : i64} {
  func.func @body(%arg0: i32, %arg1: i32, %arg2: memref<128x128xbf16, #tpu.memory_space<vmem>>, %arg3: memref<128x8xbf16, #tpu.memory_space<vmem>>, %arg4: memref<128x1xf32, #tpu.memory_space<vmem>>, %arg5: memref<1x32xf32, #tpu.memory_space<vmem>>, %arg6: memref<8x32xf32, #tpu.memory_space<vmem>>, %arg7: memref<128x32xbf16, #tpu.memory_space<vmem>>, %arg8: memref<128x8xf32, #tpu.memory_space<vmem>>) attributes {dimension_semantics = [#tpu.dimension_semantics<parallel>, #tpu.dimension_semantics<arbitrary>], iteration_bounds = array<i64: 1, 1>, scalar_prefetch = 0 : i64, scratch_operands = 1 : i64, tpu.core_type = #tpu.core_type<tc>, window_params = [{transform_indices = @transform_0, window_bounds = array<i64: 128, 128>}, {pipeline_mode = #tpu.pipeline_mode<synchronous>, transform_indices = @transform_1, window_bounds = array<i64: 128, 8>}, {transform_indices = @transform_2, window_bounds = array<i64: 128, 1>}, {pipeline_mode = #tpu.pipeline_mode<synchronous>, transform_indices = @transform_3, window_bounds = array<i64: 1, 32>}, {pipeline_mode = #tpu.pipeline_mode<synchronous>, transform_indices = @transform_4, window_bounds = array<i64: 8, 32>}, {transform_indices = @transform_5, window_bounds = array<i64: 128, 32>}]} {
    %c0_i32 = arith.constant 0 : i32
    %0 = arith.cmpi eq, %arg1, %c0_i32 : i32
    %1 = arith.extui %0 : i1 to i32
    %c0_i32_0 = arith.constant 0 : i32
    %2 = arith.cmpi ne, %1, %c0_i32_0 : i32
    scf.if %2 {
      %cst_9 = arith.constant 0.000000e+00 : f32
      %15 = vector.broadcast %cst_9 : f32 to vector<128x8xf32>
      %c0_10 = arith.constant 0 : index
      %c0_11 = arith.constant 0 : index
      %16 = vector.load %arg8[%c0_10, %c0_11] : memref<128x8xf32, #tpu.memory_space<vmem>>, vector<128x8xf32>
      tpu.vector_store %arg8[%c0_10, %c0_11], %15 {strides = array<i32>} : memref<128x8xf32, #tpu.memory_space<vmem>>, vector<128x8xf32>,
    } else {
    }
    %c128_i32 = arith.constant 128 : i32
    %3 = arith.muli %arg1, %c128_i32 : i32
    %4 = tpu.assume_multiple %3, 128 : i32
    %5 = arith.index_cast %4 : i32 to index
    %c0 = arith.constant 0 : index
    %6 = vector.load %arg3[%5, %c0] : memref<128x8xbf16, #tpu.memory_space<vmem>>, vector<128x8xbf16>
    %c0_1 = arith.constant 0 : index
    %c0_2 = arith.constant 0 : index
    %7 = vector.load %arg8[%c0_1, %c0_2] : memref<128x8xf32, #tpu.memory_space<vmem>>, vector<128x8xf32>
    %c0_3 = arith.constant 0 : index
    %c0_4 = arith.constant 0 : index
    %8 = vector.load %arg2[%c0_3, %c0_4] : memref<128x128xbf16, #tpu.memory_space<vmem>>, vector<128x128xbf16>
    %cst = arith.constant dense<0.000000e+00> : vector<128x8xf32>
    %9 = tpu.matmul %8, %6, %cst {dimension_numbers = #tpu.dot_dimension_numbers<[1], [0], [0], [1], [0, 0, 1, 1], [], []>} : vector<128x128xbf16>, vector<128x8xbf16>, vector<128x8xf32> -> vector<128x8xf32>
    %10 = arith.addf %7, %9 : vector<128x8xf32>
    %c0_5 = arith.constant 0 : index
    %c0_6 = arith.constant 0 : index
    %11 = vector.load %arg8[%c0_5, %c0_6] : memref<128x8xf32, #tpu.memory_space<vmem>>, vector<128x8xf32>
    tpu.vector_store %arg8[%c0_5, %c0_6], %10 {strides = array<i32>} : memref<128x8xf32, #tpu.memory_space<vmem>>, vector<128x8xf32>,
    %c0_i32_7 = arith.constant 0 : i32
    %12 = arith.cmpi eq, %arg1, %c0_i32_7 : i32
    %13 = arith.extui %12 : i1 to i32
    %c0_i32_8 = arith.constant 0 : i32
    %14 = arith.cmpi ne, %13, %c0_i32_8 : i32
    scf.if %14 {
      %c0_9 = arith.constant 0 : index
      %c0_10 = arith.constant 0 : index
      %15 = vector.load %arg4[%c0_9, %c0_10] : memref<128x1xf32, #tpu.memory_space<vmem>>, vector<128x1xf32>
      %c0_11 = arith.constant 0 : index
      %c0_12 = arith.constant 0 : index
      %16 = vector.load %arg8[%c0_11, %c0_12] : memref<128x8xf32, #tpu.memory_space<vmem>>, vector<128x8xf32>
      %17 = vector.broadcast %15 : vector<128x1xf32> to vector<128x8xf32>
      %18 = arith.mulf %17, %16 : vector<128x8xf32>
      %c0_13 = arith.constant 0 : index
      %c0_14 = arith.constant 0 : index
      %19 = vector.load %arg6[%c0_13, %c0_14] : memref<8x32xf32, #tpu.memory_space<vmem>>, vector<8x32xf32>
      %cst_15 = arith.constant dense<0.000000e+00> : vector<128x32xf32>
      %20 = tpu.matmul %18, %19, %cst_15 {dimension_numbers = #tpu.dot_dimension_numbers<[1], [0], [0], [1], [0, 0, 1, 1], [], []>} : vector<128x8xf32>, vector<8x32xf32>, vector<128x32xf32> -> vector<128x32xf32>
      %c0_16 = arith.constant 0 : index
      %c0_17 = arith.constant 0 : index
      %21 = vector.load %arg5[%c0_16, %c0_17] : memref<1x32xf32, #tpu.memory_space<vmem>>, vector<1x32xf32>
      %22 = vector.broadcast %21 : vector<1x32xf32> to vector<128x32xf32>
      %23 = arith.addf %20, %22 : vector<128x32xf32>
      %24 = vector.broadcast %15 : vector<128x1xf32> to vector<128x32xf32>
      %25 = arith.mulf %24, %23 : vector<128x32xf32>
      %cst_18 = arith.constant 0.000000e+00 : f32
      %26 = vector.broadcast %cst_18 : f32 to vector<128x32xf32>
      %27 = arith.maximumf %25, %26 : vector<128x32xf32>
      %28 = arith.truncf %27 : vector<128x32xf32> to vector<128x32xbf16>
      %c0_19 = arith.constant 0 : index
      %c0_20 = arith.constant 0 : index
      %29 = vector.load %arg7[%c0_19, %c0_20] : memref<128x32xbf16, #tpu.memory_space<vmem>>, vector<128x32xbf16>
      tpu.vector_store %arg7[%c0_19, %c0_20], %28 {strides = array<i32>} : memref<128x32xbf16, #tpu.memory_space<vmem>>, vector<128x32xbf16>,
    } else {
    }
    return
  }
  func.func @transform_0(%arg0: i32, %arg1: i32) -> (i32, i32) {
    %c0_i32 = arith.constant 0 : i32
    return %arg0, %arg1 : i32, i32
  }
  func.func @transform_1(%arg0: i32, %arg1: i32) -> (i32, i32) {
    %c0_i32 = arith.constant 0 : i32
    %c0_i32_0 = arith.constant 0 : i32
    %c0_i32_1 = arith.constant 0 : i32
    return %c0_i32, %c0_i32_0 : i32, i32
  }
  func.func @transform_2(%arg0: i32, %arg1: i32) -> (i32, i32) {
    %c0_i32 = arith.constant 0 : i32
    %c0_i32_0 = arith.constant 0 : i32
    return %arg0, %c0_i32 : i32, i32
  }
  func.func @transform_3(%arg0: i32, %arg1: i32) -> (i32, i32) {
    %c0_i32 = arith.constant 0 : i32
    %c0_i32_0 = arith.constant 0 : i32
    %c0_i32_1 = arith.constant 0 : i32
    return %c0_i32, %c0_i32_0 : i32, i32
  }
  func.func @transform_4(%arg0: i32, %arg1: i32) -> (i32, i32) {
    %c0_i32 = arith.constant 0 : i32
    %c0_i32_0 = arith.constant 0 : i32
    %c0_i32_1 = arith.constant 0 : i32
    return %c0_i32, %c0_i32_0 : i32, i32
  }
  func.func @transform_5(%arg0: i32, %arg1: i32) -> (i32, i32) {
    %c0_i32 = arith.constant 0 : i32
    %c0_i32_0 = arith.constant 0 : i32
    return %arg0, %c0_i32 : i32, i32
  }
}

</mosaic_0001>

<bundles_post_ra>
// kernel: tpu_custom_call.1
= control target key start
LH: loop header
LB: loop body
LE: loop exit
PB: predicated region body
PF: predicated region fallthrough
CT: control target
= control target key end

     0   :  { %v711_v1 = vmov 0   ;;  %vm24_vm0 = vcmask 64512   ;;  %v712_v33 = vmov 0.0   ;;  %vm569_vm1 = vcmask 257024   ;;  %s1039_s1 = inlined_call_operand.vmem [shape: bf16[128,8], index: 1, kind: input, shape index: {}]   ;;  %s1040_s2 = inlined_call_operand.vmem [shape: f32[128,1], index: 2, kind: input, shape index: {}]   ;;  %s1041_s0 = inlined_call_operand.vmem [shape: bf16[128,128], index: 0, kind: input, shape index: {}]   ;;  %s1042_s3 = inlined_call_operand.vmem [shape: f32[1,32], index: 3, kind: input, shape index: {}]   ;;  %s1043_s4 = inlined_call_operand.vmem [shape: f32[8,32], index: 4, kind: input, shape index: {}]   ;;  %s1044_s5 = inlined_call_operand.vmem [shape: bf16[128,32], index: 5, kind: output, shape index: {}]  }
   0x1   :  { %v679_v0 = vld [vmem:[%s1039_s1 + $0x38] sm:$0xff]  ;;  %707 = vset.pattern.permute.xlu0 %v711_v1  ;;  %708 = vset.pattern.permute.xlu1 %v711_v1  ;;  %v678_v2 = vld [vmem:[%s1039_s1 + $0x30] sm:$0xff]  ;;  %v275_v3 = vld [vmem:[%s1040_s2] sm:$0xff]  ;;  %25 = vst.msk [vmem:[#allocation2] sm:$0xff] %vm24_vm0, %v712_v33 }
   0x2   :  { %709 = vset.pattern.permute.xlu2 %v711_v1  ;;  %190 = vmatpush.bf16.msra.mxu0 %v679_v0  ;;  %v277_v4 = vld [vmem:[%s1040_s2 + $0x10] sm:$0xff]  ;;  %v677_v5 = vld [vmem:[%s1039_s1 + $0x28] sm:$0xff]  ;;  %v676_v7 = vld [vmem:[%s1039_s1 + $0x20] sm:$0xff]  ;;  %26 = vst.msk [vmem:[#allocation2 + $0x8] sm:$0xff] %vm24_vm0, %v712_v33 }
   0x3   :  { %688 = vmatpush.bf16.msra.mxu2 %v679_v0  ;;  %689 = vmatpush.bf16.msra.mxu3 %v679_v0  ;;  %v276_v6 = vld [vmem:[%s1040_s2 + $0x8] sm:$0xff]  ;;  %v675_v8 = vld [vmem:[%s1039_s1 + $0x18] sm:$0xff]  ;;  %v674_v11 = vld [vmem:[%s1039_s1 + $0x10] sm:$0xff]  ;;  %27 = vst.msk [vmem:[#allocation2 + $0x10] sm:$0xff] %vm24_vm0, %v712_v33 }
   0x4   :  { %309 = vperm.xlu0 %707, %v275_v3   ;;  %319 = vperm.xlu1 %708, %v277_v4   ;;  %v286_v9 = vld [vmem:[%s1040_s2 + $0x58] sm:$0xff]  ;;  %v673_v12 = vld [vmem:[%s1039_s1 + $0x8] sm:$0xff]  ;;  %v281_v13 = vld [vmem:[%s1040_s2 + $0x30] sm:$0xff]  ;;  %28 = vst.msk [vmem:[#allocation2 + $0x18] sm:$0xff] %vm24_vm0, %v712_v33 }
   0x5   :  { %v278_v10 = vld [vmem:[%s1040_s2 + $0x18] sm:$0xff]  ;;  %v280_v14 = vld [vmem:[%s1040_s2 + $0x28] sm:$0xff]  ;;  %v672_v15 = vld [vmem:[%s1039_s1] sm:$0xff]  ;;  %29 = vst.msk [vmem:[#allocation2 + $0x20] sm:$0xff] %vm24_vm0, %v712_v33 }
   0x6   :  { %191 = vmatpush.bf16.msra.mxu0 %v678_v2  ;;  %v680_v16 = vld [vmem:[%s1041_s0] sm:$0xff]  ;;  %v683_v17 = vld [vmem:[%s1041_s0 + $0x18] sm:$0xff]  ;;  %v289_v19 = vld [vmem:[%s1040_s2 + $0x70] sm:$0xff]  ;;  %30 = vst.msk [vmem:[#allocation2 + $0x28] sm:$0xff] %vm24_vm0, %v712_v33 }
   0x7   :  { %690 = vmatpush.bf16.msra.mxu2 %v678_v2  ;;  %691 = vmatpush.bf16.msra.mxu3 %v678_v2  ;;  %v687_v18 = vld [vmem:[%s1041_s0 + $0x38] sm:$0xff]  ;;  %v285_v20 = vld [vmem:[%s1040_s2 + $0x50] sm:$0xff]  ;;  %v288_v21 = vld [vmem:[%s1040_s2 + $0x68] sm:$0xff]  ;;  %31 = vst.msk [vmem:[#allocation2 + $0x30] sm:$0xff] %vm24_vm0, %v712_v33 }
   0x8   :  { %359 = vperm.xlu2 %709, %v285_v20   ;;  %v279_v22 = vld [vmem:[%s1040_s2 + $0x20] sm:$0xff]  ;;  %v284_v23 = vld [vmem:[%s1040_s2 + $0x48] sm:$0xff]  ;;  %v282_v28 = vld [vmem:[%s1040_s2 + $0x38] sm:$0xff]  ;;  %32 = vst.msk [vmem:[#allocation2 + $0x38] sm:$0xff] %vm24_vm0, %v712_v33 }
   0x9   :  { %v283_v24 = vld [vmem:[%s1040_s2 + $0x40] sm:$0xff]  ;;  %v681_v25 = vld [vmem:[%s1041_s0 + $0x8] sm:$0xff]  ;;  %v682_v29 = vld [vmem:[%s1041_s0 + $0x10] sm:$0xff]  ;;  %33 = vst.msk [vmem:[#allocation2 + $0x40] sm:$0xff] %vm24_vm0, %v712_v33 }
   0xa   :  { %192 = vmatpush.bf16.msra.mxu0 %v677_v5  ;;  %v684_v26 = vld [vmem:[%s1041_s0 + $0x20] sm:$0xff]  ;;  %v685_v30 = vld [vmem:[%s1041_s0 + $0x28] sm:$0xff]  ;;  %v290_v31 = vld [vmem:[%s1040_s2 + $0x78] sm:$0xff]  ;;  %34 = vst.msk [vmem:[#allocation2 + $0x48] sm:$0xff] %vm24_vm0, %v712_v33 }
   0xb   :  { %692 = vmatpush.bf16.msra.mxu2 %v677_v5  ;;  %693 = vmatpush.bf16.msra.mxu3 %v677_v5  ;;  %v287_v27 = vld [vmem:[%s1040_s2 + $0x60] sm:$0xff]  ;;  %v686_v32 = vld [vmem:[%s1041_s0 + $0x30] sm:$0xff]  ;;  %35 = vst.msk [vmem:[#allocation2 + $0x50] sm:$0xff] %vm24_vm0, %v712_v33  ;;  %v63_v41 = vld [vmem:[#allocation2 + $0x8] sm:$0xff] }
   0xc   :  { %314 = vperm.xlu0 %707, %v276_v6   ;;  %324 = vperm.xlu1 %708, %v278_v10   ;;  %36 = vst.msk [vmem:[#allocation2 + $0x58] sm:$0xff] %vm24_vm0, %v712_v33  ;;  %v403_v34 = vld [vmem:[%s1043_s4] sm:$0xff]  ;;  %v64_v53 = vld [vmem:[#allocation2 + $0x10] sm:$0xff]  ;;  %v65_v0 = vld [vmem:[#allocation2 + $0x18] sm:$0xff] }
   0xd   :  { %37 = vst.msk [vmem:[#allocation2 + $0x60] sm:$0xff] %vm24_vm0, %v712_v33  ;;  %471 = vmatpush.msra.mxu1 %v403_v34  ;;  %v62_v35 = vld [vmem:[#allocation2] sm:$0xff] }
   0xe   :  { %193 = vmatpush.bf16.msra.mxu0 %v676_v7  ;;  %38 = vst.msk [vmem:[#allocation2 + $0x68] sm:$0xff] %vm24_vm0, %v712_v33  ;;  %v68_v38 = vld [vmem:[#allocation2 + $0x30] sm:$0xff] }
   0xf   :  { %694 = vmatpush.bf16.msra.mxu2 %v676_v7  ;;  %695 = vmatpush.bf16.msra.mxu3 %v676_v7  ;;  %39 = vst.msk [vmem:[#allocation2 + $0x70] sm:$0xff] %vm24_vm0, %v712_v33  ;;  %v69_v50 = vld [vmem:[#allocation2 + $0x38] sm:$0xff] }
  0x10   :  { %329 = vperm.xlu2 %709, %v279_v22   ;;  %40 = vst.msk [vmem:[#allocation2 + $0x78] sm:$0xff] %vm24_vm0, %v712_v33  ;;  %v70_v62 = vld [vmem:[#allocation2 + $0x40] sm:$0xff] }
  0x11   :  { %v71_v7 = vld [vmem:[#allocation2 + $0x48] sm:$0xff] }
  0x12   :  { %194 = vmatpush.bf16.msra.mxu0 %v675_v8 }
  0x13   :  { %696 = vmatpush.bf16.msra.mxu2 %v675_v8  ;;  %697 = vmatpush.bf16.msra.mxu3 %v675_v8 }
  0x14   :  { %364 = vperm.xlu0 %707, %v286_v9   ;;  %334 = vperm.xlu1 %708, %v280_v14   ;;  %v66_v9 = vld [vmem:[#allocation2 + $0x20] sm:$0xff] }
  0x16   :  { %195 = vmatpush.bf16.msra.mxu0 %v674_v11  ;;  %v76_v39 = vld [vmem:[#allocation2 + $0x70] sm:$0xff] }
  0x17   :  { %698 = vmatpush.bf16.msra.mxu2 %v674_v11  ;;  %699 = vmatpush.bf16.msra.mxu3 %v674_v11  ;;  %v77_v51 = vld [vmem:[#allocation2 + $0x78] sm:$0xff] }
  0x18   :  { %369 = vperm.xlu2 %709, %v287_v27  }
  0x1a   :  { %196 = vmatpush.bf16.msra.mxu0 %v673_v12 }
  0x1b   :  { %700 = vmatpush.bf16.msra.mxu2 %v673_v12  ;;  %701 = vmatpush.bf16.msra.mxu3 %v673_v12 }
  0x1c   :  { %339 = vperm.xlu0 %707, %v281_v13   ;;  %374 = vperm.xlu1 %708, %v288_v21  }
  0x1e   :  { %197 = vmatpush.bf16.msra.mxu0 %v672_v15 }
  0x1f   :  { %702 = vmatpush.bf16.msra.mxu2 %v672_v15  ;;  %703 = vmatpush.bf16.msra.mxu3 %v672_v15 }
  0x20   :  { %344 = vperm.xlu2 %709, %v282_v28  }
  0x21   :  { %198 = vmatmul.bf16.vlgmr.msra.gmra.mxu0 %v680_v16 }
  0x22   :  { %213 = vmatmul.bf16.vlgmr.msra.gmra.mxu2 %v683_v17  ;;  %233 = vmatmul.bf16.vlgmr.msra.gmra.mxu3 %v687_v18  ;;  %v72_v17 = vld [vmem:[#allocation2 + $0x50] sm:$0xff] }
  0x23   :  { %704 = vmatpush.msrb.mxu3 %v403_v34 }
  0x24   :  { %379 = vperm.xlu0 %707, %v289_v19   ;;  %349 = vperm.xlu1 %708, %v283_v24   ;;  %v67_v19 = vld [vmem:[#allocation2 + $0x28] sm:$0xff] }
  0x28   :  { %384 = vperm.xlu2 %709, %v290_v31  }
  0x2c   :  { %354 = vperm.xlu0 %707, %v284_v23  }
  0x31   :  { %203 = vmatmul.bf16.gmra.mxu0 %v681_v25 }
  0x32   :  { %218 = vmatmul.bf16.gmra.mxu2 %v684_v26  ;;  %v73_v26 = vld [vmem:[#allocation2 + $0x58] sm:$0xff] }
  0x41   :  { %208 = vmatmul.bf16.gmra.mxu0 %v682_v29 }
  0x42   :  { %223 = vmatmul.bf16.gmra.mxu2 %v685_v30 }
  0x52   :  { %228 = vmatmul.bf16.gmra.mxu2 %v686_v32 }
  0x62   :  { %v879_v11 = vpop.permute.xlu2 %359 }
  0x6a   :  { %v888_v23 = vpop.permute.xlu2 %329 }
  0x76   :  { %v859_v44 = vpop.permute.xlu0 %309  ;;  %v873_v2 = vpop.permute.xlu1 %319 }
  0x7e   :  { %v867_v59 = vpop.permute.xlu0 %314  ;;  %v882_v14 = vpop.permute.xlu1 %324 }
  0x86   :  { %v893_v29 = vpop.permute.xlu0 %364  ;;  %v897_v32 = vpop.permute.xlu1 %334 }
  0x9e   :  { %v199_v36 = vpop.f32.mrf.mxu0 }
  0x9f   :  { %v239_v37 = vadd.f32 %v199_v36, %v62_v35  ;;  %v74_v35 = vld [vmem:[#allocation2 + $0x60] sm:$0xff]  ;;  %v902_v36 = vpop.permute.xlu2 %369 }
  0xa1   :  { %256 = vst.msk [vmem:[#allocation2] sm:$0xff] %vm24_vm0, %v239_v37 }
  0xa5   :  { %v214_v40 = vpop.f32.mrf.mxu2  ;;  %v234_v43 = vpop.f32.mrf.mxu3 }
  0xa6   :  { %v245_v42 = vadd.f32 %v214_v40, %v68_v38  ;;  %v201_v45 = vpop.f32.mrf.mxu0  ;;  %v253_v46 = vadd.f32 %v234_v43, %v76_v39 }
  0xa7   :  { %v240_v47 = vadd.f32 %v201_v45, %v63_v41  ;;  %v75_v45 = vld [vmem:[#allocation2 + $0x68] sm:$0xff] }
  0xa8   :  { %262 = vst.msk [vmem:[#allocation2 + $0x30] sm:$0xff] %vm24_vm0, %v245_v42  ;;  %v291_v48 = vld [vmem:[#allocation2] sm:$0xff]  ;;  %v906_v42 = vpop.permute.xlu0 %339 }
  0xa9   :  { %270 = vst.msk [vmem:[#allocation2 + $0x70] sm:$0xff] %vm24_vm0, %v253_v46  ;;  %v387_v49 = vmul.f32 %v859_v44, %v291_v48  ;;  %v911_v46 = vpop.permute.xlu1 %374 }
  0xaa   :  { %257 = vst.msk [vmem:[#allocation2 + $0x8] sm:$0xff] %vm24_vm0, %v240_v47 }
  0xab   :  { %656 = vmatmul.msk.f32.vlgmr.msra.gmra.mxu1 %vm24_vm0, %v387_v49  ;;  %v913_v49 = vpop.permute.xlu2 %344 }
  0xad   :  { %v216_v52 = vpop.f32.mrf.mxu2  ;;  %v236_v55 = vpop.f32.mrf.mxu3 }
  0xae   :  { %v246_v54 = vadd.f32 %v216_v52, %v69_v50  ;;  %v204_v56 = vpop.f32.mrf.mxu0  ;;  %v254_v57 = vadd.f32 %v236_v55, %v77_v51 }
  0xaf   :  { %v241_v58 = vadd.f32 %v204_v56, %v64_v53  ;;  %v297_v40 = vld [vmem:[#allocation2 + $0x30] sm:$0xff] }
  0xb0   :  { %263 = vst.msk [vmem:[#allocation2 + $0x38] sm:$0xff] %vm24_vm0, %v246_v54  ;;  %v393_v43 = vmul.f32 %v906_v42, %v297_v40  ;;  %v920_v54 = vpop.permute.xlu0 %379 }
  0xb1   :  { %v292_v60 = vld [vmem:[#allocation2 + $0x8] sm:$0xff]  ;;  %271 = vst.msk [vmem:[#allocation2 + $0x78] sm:$0xff] %vm24_vm0, %v254_v57  ;;  %v922_v55 = vpop.permute.xlu1 %349 }
  0xb2   :  { %258 = vst.msk [vmem:[#allocation2 + $0x10] sm:$0xff] %vm24_vm0, %v241_v58  ;;  %v388_v61 = vmul.f32 %v867_v59, %v292_v60 }
  0xb4   :  { %657 = vmatmul.msk.f32.gmra.mxu1 %vm24_vm0, %v388_v61  ;;  %v305_v61 = vld [vmem:[#allocation2 + $0x70] sm:$0xff] }
  0xb5   :  { %v219_v63 = vpop.f32.mrf.mxu2 }
  0xb6   :  { %v247_v1 = vadd.f32 %v219_v63, %v70_v62  ;;  %v206_v3 = vpop.f32.mrf.mxu0  ;;  %v401_v63 = vmul.f32 %v920_v54, %v305_v61 }
  0xb7   :  { %v242_v4 = vadd.f32 %v206_v3, %v65_v0  ;;  %v298_v50 = vld [vmem:[#allocation2 + $0x38] sm:$0xff]  ;;  %v934_v3 = vpop.permute.xlu2 %384 }
  0xb8   :  { %264 = vst.msk [vmem:[#allocation2 + $0x40] sm:$0xff] %vm24_vm0, %v247_v1  ;;  %v394_v53 = vmul.f32 %v913_v49, %v298_v50  ;;  %v929_v0 = vpop.permute.xlu0 %354 }
  0xb9   :  { %v293_v5 = vld [vmem:[#allocation2 + $0x10] sm:$0xff]  ;;  %259 = vst.msk [vmem:[#allocation2 + $0x18] sm:$0xff] %vm24_vm0, %v242_v4  ;;  %v306_v4 = vld [vmem:[#allocation2 + $0x78] sm:$0xff] }
  0xba   :  { %v389_v6 = vmul.f32 %v873_v2, %v293_v5  ;;  %v402_v5 = vmul.f32 %v934_v3, %v306_v4 }
  0xbc   :  { %658 = vmatmul.msk.f32.gmra.mxu1 %vm24_vm0, %v389_v6  ;;  %v941_v6 = vld [vmem:[%s1042_s3] ss:$0 sm:$0xff] }
  0xbd   :  { %v221_v8 = vpop.f32.mrf.mxu2 }
  0xbe   :  { %v248_v10 = vadd.f32 %v221_v8, %v71_v7  ;;  %v209_v12 = vpop.f32.mrf.mxu0 }
  0xbf   :  { %v243_v13 = vadd.f32 %v209_v12, %v66_v9  ;;  %v299_v56 = vld [vmem:[#allocation2 + $0x40] sm:$0xff] }
  0xc0   :  { %265 = vst.msk [vmem:[#allocation2 + $0x48] sm:$0xff] %vm24_vm0, %v248_v10  ;;  %v294_v15 = vld [vmem:[#allocation2 + $0x18] sm:$0xff]  ;;  %v395_v60 = vmul.f32 %v922_v55, %v299_v56 }
  0xc1   :  { %260 = vst.msk [vmem:[#allocation2 + $0x20] sm:$0xff] %vm24_vm0, %v243_v13  ;;  %v390_v16 = vmul.f32 %v882_v14, %v294_v15 }
  0xc4   :  { %659 = vmatmul.msk.f32.gmra.mxu1 %vm24_vm0, %v390_v16 }
  0xc5   :  { %v224_v18 = vpop.f32.mrf.mxu2 }
  0xc6   :  { %v249_v20 = vadd.f32 %v224_v18, %v72_v17  ;;  %v211_v21 = vpop.f32.mrf.mxu0 }
  0xc7   :  { %v244_v22 = vadd.f32 %v211_v21, %v67_v19  ;;  %v300_v62 = vld [vmem:[#allocation2 + $0x48] sm:$0xff] }
  0xc8   :  { %266 = vst.msk [vmem:[#allocation2 + $0x50] sm:$0xff] %vm24_vm0, %v249_v20  ;;  %v295_v24 = vld [vmem:[#allocation2 + $0x20] sm:$0xff]  ;;  %v396_v1 = vmul.f32 %v929_v0, %v300_v62 }
  0xc9   :  { %261 = vst.msk [vmem:[#allocation2 + $0x28] sm:$0xff] %vm24_vm0, %v244_v22  ;;  %v391_v25 = vmul.f32 %v888_v23, %v295_v24 }
  0xcc   :  { %660 = vmatmul.msk.f32.gmra.mxu1 %vm24_vm0, %v391_v25 }
  0xcd   :  { %v226_v27 = vpop.f32.mrf.mxu2 }
  0xce   :  { %v250_v28 = vadd.f32 %v226_v27, %v73_v26 }
  0xcf   :  { %v301_v30 = vld [vmem:[#allocation2 + $0x50] sm:$0xff] }
  0xd0   :  { %267 = vst.msk [vmem:[#allocation2 + $0x58] sm:$0xff] %vm24_vm0, %v250_v28  ;;  %v397_v31 = vmul.f32 %v879_v11, %v301_v30  ;;  %v296_v33 = vld [vmem:[#allocation2 + $0x28] sm:$0xff] }
  0xd1   :  { %v392_v34 = vmul.f32 %v897_v32, %v296_v33 }
  0xd2   :  { %666 = vmatmul.msk.f32.vlgmr.msrb.gmra.mxu3 %vm24_vm0, %v397_v31 }
  0xd4   :  { %661 = vmatmul.msk.f32.gmra.mxu1 %vm24_vm0, %v392_v34 }
  0xd5   :  { %v229_v37 = vpop.f32.mrf.mxu2 }
  0xd6   :  { %v251_v38 = vadd.f32 %v229_v37, %v74_v35 }
  0xd7   :  { %v302_v39 = vld [vmem:[#allocation2 + $0x58] sm:$0xff] }
  0xd8   :  { %268 = vst.msk [vmem:[#allocation2 + $0x60] sm:$0xff] %vm24_vm0, %v251_v38  ;;  %v398_v41 = vmul.f32 %v893_v29, %v302_v39 }
  0xda   :  { %667 = vmatmul.msk.f32.gmra.mxu3 %vm24_vm0, %v398_v41 }
  0xdc   :  { %662 = vmatmul.msk.f32.gmra.mxu1 %vm24_vm0, %v393_v43 }
  0xdd   :  { %v231_v47 = vpop.f32.mrf.mxu2 }
  0xde   :  { %v252_v48 = vadd.f32 %v231_v47, %v75_v45 }
  0xdf   :  { %v303_v51 = vld [vmem:[#allocation2 + $0x60] sm:$0xff] }
  0xe0   :  { %269 = vst.msk [vmem:[#allocation2 + $0x68] sm:$0xff] %vm24_vm0, %v252_v48  ;;  %v399_v52 = vmul.f32 %v902_v36, %v303_v51 }
  0xe2   :  { %668 = vmatmul.msk.f32.gmra.mxu3 %vm24_vm0, %v399_v52 }
  0xe4   :  { %663 = vmatmul.msk.f32.gmra.mxu1 %vm24_vm0, %v394_v53 }
  0xe7   :  { %v304_v57 = vld [vmem:[#allocation2 + $0x68] sm:$0xff] }
  0xe8   :  { %v400_v58 = vmul.f32 %v911_v46, %v304_v57 }
  0xea   :  { %669 = vmatmul.msk.f32.gmra.mxu3 %vm24_vm0, %v400_v58 }
  0xec   :  { %664 = vmatmul.msk.f32.gmra.mxu1 %vm24_vm0, %v395_v60 }
  0xf2   :  { %670 = vmatmul.msk.f32.gmra.mxu3 %vm24_vm0, %v401_v63 }
  0xf4   :  { %665 = vmatmul.msk.f32.gmra.mxu1 %vm24_vm0, %v396_v1 }
  0xfa   :  { %671 = vmatmul.msk.f32.gmra.mxu3 %vm24_vm0, %v402_v5 }
 0x128   :  { %v473_v7 = vpop.f32.mrf.mxu1 }
 0x129   :  { %v474_v8 = vadd.f32 %v941_v6, %v473_v7 }
 0x12b   :  { %v521_v9 = vmul.f32 %v474_v8, %v859_v44 }
 0x12d   :  { %v537_v10 = vmax.f32 %v521_v9, 0.0 }
 0x12f   :  { %v553_v12 = vpack.c.bf16 %v537_v10, %v537_v10 }
 0x131   :  { %v476_v13 = vpop.f32.mrf.mxu1  ;;  %570 = vst.msk [vmem:[%s1044_s5] sm:$0xf] %vm569_vm1, %v553_v12 }
 0x132   :  { %v477_v15 = vadd.f32 %v941_v6, %v476_v13 }
 0x134   :  { %v522_v16 = vmul.f32 %v477_v15, %v867_v59 }
 0x136   :  { %v538_v17 = vmax.f32 %v522_v16, 0.0 }
 0x138   :  { %v554_v18 = vpack.c.bf16 %v538_v17, %v538_v17 }
 0x139   :  { %v479_v19 = vpop.f32.mrf.mxu1 }
 0x13a   :  { %571 = vst.msk [vmem:[%s1044_s5 + $0x4] sm:$0xf] %vm569_vm1, %v554_v18  ;;  %v480_v44 = vadd.f32 %v941_v6, %v479_v19 }
 0x13c   :  { %v523_v20 = vmul.f32 %v480_v44, %v873_v2 }
 0x13e   :  { %v539_v21 = vmax.f32 %v523_v20, 0.0 }
 0x140   :  { %v555_v22 = vpack.c.bf16 %v539_v21, %v539_v21 }
 0x141   :  { %v482_v24 = vpop.f32.mrf.mxu1 }
 0x142   :  { %572 = vst.msk [vmem:[%s1044_s5 + $0x8] sm:$0xf] %vm569_vm1, %v555_v22  ;;  %v483_v59 = vadd.f32 %v941_v6, %v482_v24 }
 0x144   :  { %v524_v25 = vmul.f32 %v483_v59, %v882_v14 }
 0x146   :  { %v540_v26 = vmax.f32 %v524_v25, 0.0 }
 0x148   :  { %v556_v27 = vpack.c.bf16 %v540_v26, %v540_v26 }
 0x149   :  { %v485_v28 = vpop.f32.mrf.mxu1 }
 0x14a   :  { %573 = vst.msk [vmem:[%s1044_s5 + $0xc] sm:$0xf] %vm569_vm1, %v556_v27  ;;  %v486_v2 = vadd.f32 %v941_v6, %v485_v28 }
 0x14c   :  { %v525_v30 = vmul.f32 %v486_v2, %v888_v23 }
 0x14e   :  { %v541_v31 = vmax.f32 %v525_v30, 0.0 }
 0x150   :  { %v557_v33 = vpack.c.bf16 %v541_v31, %v541_v31 }
 0x151   :  { %v488_v34 = vpop.f32.mrf.mxu1 }
 0x152   :  { %574 = vst.msk [vmem:[%s1044_s5 + $0x10] sm:$0xf] %vm569_vm1, %v557_v33  ;;  %v489_v14 = vadd.f32 %v941_v6, %v488_v34 }
 0x154   :  { %v526_v35 = vmul.f32 %v489_v14, %v897_v32 }
 0x155   :  { %v503_v37 = vpop.f32.mrf.mxu3 }
 0x156   :  { %v542_v38 = vmax.f32 %v526_v35, 0.0  ;;  %v504_v39 = vadd.f32 %v941_v6, %v503_v37 }
 0x158   :  { %v558_v40 = vpack.c.bf16 %v542_v38, %v542_v38  ;;  %v531_v41 = vmul.f32 %v504_v39, %v879_v11 }
 0x159   :  { %v491_v23 = vpop.f32.mrf.mxu1 }
 0x15a   :  { %575 = vst.msk [vmem:[%s1044_s5 + $0x14] sm:$0xf] %vm569_vm1, %v558_v40  ;;  %v547_v43 = vmax.f32 %v531_v41, 0.0  ;;  %v492_v45 = vadd.f32 %v941_v6, %v491_v23 }
 0x15c   :  { %v563_v47 = vpack.c.bf16 %v547_v43, %v547_v43  ;;  %v527_v48 = vmul.f32 %v492_v45, %v906_v42 }
 0x15d   :  { %v506_v32 = vpop.f32.mrf.mxu3 }
 0x15e   :  { %580 = vst.msk [vmem:[%s1044_s5 + $0x28] sm:$0xf] %vm569_vm1, %v563_v47  ;;  %v543_v50 = vmax.f32 %v527_v48, 0.0  ;;  %v507_v11 = vadd.f32 %v941_v6, %v506_v32 }
 0x160   :  { %v559_v51 = vpack.c.bf16 %v543_v50, %v543_v50  ;;  %v532_v52 = vmul.f32 %v507_v11, %v893_v29 }
 0x161   :  { %v494_v53 = vpop.f32.mrf.mxu1 }
 0x162   :  { %576 = vst.msk [vmem:[%s1044_s5 + $0x18] sm:$0xf] %vm569_vm1, %v559_v51  ;;  %v548_v56 = vmax.f32 %v532_v52, 0.0  ;;  %v495_v42 = vadd.f32 %v941_v6, %v494_v53 }
 0x164   :  { %v564_v57 = vpack.c.bf16 %v548_v56, %v548_v56  ;;  %v528_v58 = vmul.f32 %v495_v42, %v913_v49 }
 0x165   :  { %v509_v60 = vpop.f32.mrf.mxu3 }
 0x166   :  { %581 = vst.msk [vmem:[%s1044_s5 + $0x2c] sm:$0xf] %vm569_vm1, %v564_v57  ;;  %v544_v61 = vmax.f32 %v528_v58, 0.0  ;;  %v510_v29 = vadd.f32 %v941_v6, %v509_v60 }
 0x168   :  { %v560_v62 = vpack.c.bf16 %v544_v61, %v544_v61  ;;  %v533_v63 = vmul.f32 %v510_v29, %v902_v36 }
 0x169   :  { %v497_v1 = vpop.f32.mrf.mxu1 }
 0x16a   :  { %577 = vst.msk [vmem:[%s1044_s5 + $0x1c] sm:$0xf] %vm569_vm1, %v560_v62  ;;  %v549_v4 = vmax.f32 %v533_v63, 0.0  ;;  %v498_v49 = vadd.f32 %v941_v6, %v497_v1 }
 0x16c   :  { %v565_v5 = vpack.c.bf16 %v549_v4, %v549_v4  ;;  %v529_v7 = vmul.f32 %v498_v49, %v922_v55 }
 0x16d   :  { %v512_v8 = vpop.f32.mrf.mxu3 }
 0x16e   :  { %582 = vst.msk [vmem:[%s1044_s5 + $0x30] sm:$0xf] %vm569_vm1, %v565_v5  ;;  %v545_v9 = vmax.f32 %v529_v7, 0.0  ;;  %v513_v36 = vadd.f32 %v941_v6, %v512_v8 }
 0x170   :  { %v561_v10 = vpack.c.bf16 %v545_v9, %v545_v9  ;;  %v534_v12 = vmul.f32 %v513_v36, %v911_v46 }
 0x171   :  { %v500_v13 = vpop.f32.mrf.mxu1 }
 0x172   :  { %578 = vst.msk [vmem:[%s1044_s5 + $0x20] sm:$0xf] %vm569_vm1, %v561_v10  ;;  %v550_v15 = vmax.f32 %v534_v12, 0.0  ;;  %v501_v55 = vadd.f32 %v941_v6, %v500_v13 }
 0x174   :  { %v566_v16 = vpack.c.bf16 %v550_v15, %v550_v15  ;;  %v530_v17 = vmul.f32 %v501_v55, %v929_v0 }
 0x175   :  { %v515_v18 = vpop.f32.mrf.mxu3 }
 0x176   :  { %583 = vst.msk [vmem:[%s1044_s5 + $0x34] sm:$0xf] %vm569_vm1, %v566_v16  ;;  %v546_v19 = vmax.f32 %v530_v17, 0.0  ;;  %v516_v46 = vadd.f32 %v941_v6, %v515_v18 }
 0x178   :  { %v562_v44 = vpack.c.bf16 %v546_v19, %v546_v19  ;;  %v535_v20 = vmul.f32 %v516_v46, %v920_v54 }
 0x17a   :  { %579 = vst.msk [vmem:[%s1044_s5 + $0x24] sm:$0xf] %vm569_vm1, %v562_v44  ;;  %v551_v21 = vmax.f32 %v535_v20, 0.0 }
 0x17c   :  { %v567_v22 = vpack.c.bf16 %v551_v21, %v551_v21 }
 0x17d   :  { %v518_v0 = vpop.f32.mrf.mxu3 }
 0x17e   :  { %584 = vst.msk [vmem:[%s1044_s5 + $0x38] sm:$0xf] %vm569_vm1, %v567_v22  ;;  %v519_v24 = vadd.f32 %v941_v6, %v518_v0 }
 0x180   :  { %v536_v59 = vmul.f32 %v519_v24, %v934_v3 }
 0x182   :  { %v552_v25 = vmax.f32 %v536_v59, 0.0 }
 0x184   :  { %v568_v26 = vpack.c.bf16 %v552_v25, %v552_v25 }
 0x186   :  { %585 = vst.msk [vmem:[%s1044_s5 + $0x3c] sm:$0xf] %vm569_vm1, %v568_v26 }

</bundles_post_ra>
